<compile_context>
chip_gen: v6e
topology: v6e:2x2x1
jax: 0.10.0
libtpu: 0.0.40
codegen_flags: <defaults>
</compile_context>

<pallas_src>
import math
import numpy as np
import jax
import jax.numpy as jnp
from jax import lax
from jax.experimental import pallas as pl
from jax.experimental.pallas import tpu as pltpu


_BINOMIAL = {
    1: [1.0],
    2: [1.0, 1.0],
    3: [1.0, 2.0, 1.0],
    4: [1.0, 3.0, 3.0, 1.0],
    5: [1.0, 4.0, 6.0, 4.0, 1.0],
    6: [1.0, 5.0, 10.0, 10.0, 5.0, 1.0],
    7: [1.0, 6.0, 15.0, 20.0, 15.0, 6.0, 1.0],
}


def _pad_sizes(filt_size, pad_off):
    lo = int(1.0 * (filt_size - 1) / 2) + pad_off
    hi = int(math.ceil(1.0 * (filt_size - 1) / 2)) + pad_off
    return lo, hi


def _src_index(i, n, pad_type):
    """Map a padded-coordinate index to an original index (None == zero pad)."""
    if 0 <= i < n:
        return i
    if pad_type in ("refl", "reflect"):
        return -i if i < 0 else 2 * n - 2 - i
    if pad_type in ("repl", "replicate"):
        return 0 if i < 0 else n - 1
    return None  # zero padding -> this tap contributes nothing


def _filter_matrix(n_in, pad_lo, pad_hi, taps, stride, pad_type):
    """(n_out, n_in) matrix M so that M @ v == strided 1-D conv of the padded v."""
    k = len(taps)
    n_out = (n_in + pad_lo + pad_hi - k) // stride + 1
    m = np.zeros((n_out, n_in), dtype=np.float64)
    for o in range(n_out):
        for t in range(k):
            src = _src_index(o * stride + t - pad_lo, n_in, pad_type)
            if src is not None:
                m[o, src] += taps[t]
    return m.astype(np.float32)


def _downsample_kernel(x_ref, hmat_ref, wmat_ref, o_ref):
    # x_ref : (Cb, H, W)   hmat_ref : (Ho, H)   wmat_ref : (W, Wo)
    # o_ref : (Cb, Ho, Wo)
    x = x_ref[...]
    hmat = hmat_ref[...]
    wmat = wmat_ref[...]
    cb, h, w = x.shape
    ho = hmat.shape[0]
    wo = wmat.shape[1]

    # Horizontal taps + stride + padding as one small matmul, batched over channels.
    wmat_b = jnp.broadcast_to(wmat[None], (cb, w, wo))
    xw = jnp.einsum("chw,cwo->cho", x, wmat_b,
                    preferred_element_type=jnp.float32)       # (Cb, H, Wo)

    # Vertical taps + stride + padding, batched over channels.
    hmat_b = jnp.broadcast_to(hmat[None], (cb, ho, h))
    out = jnp.einsum("coh,chw->cow", hmat_b, xw,
                     preferred_element_type=jnp.float32)      # (Cb, Ho, Wo)

    o_ref[...] = out.astype(o_ref.dtype)


def _pick_channel_block(c, h, w, itemsize, budget_bytes=2 << 20):
    """Largest divisor of c whose (cb, H, W) input block stays under the VMEM budget."""
    max_cb = max(1, budget_bytes // max(1, h * w * itemsize))
    cb = 1
    for d in range(1, c + 1):
        if c % d == 0 and d <= max_cb:
            cb = d
    return cb


def downsample_antialias_pallas(x, *, filt_size=3, stride=2, pad_off=0,
                                pad_type="reflect", channel_block=None):
    """x: (B, C, H, W) NCHW. Returns the anti-aliased, stride-`stride` downsampled NCHW array."""
    b, c, h, w = x.shape
    a = np.asarray(_BINOMIAL[filt_size], dtype=np.float64)
    taps = a / a.sum()                      # separable 1-D taps; outer product == 2-D filter
    pad_lo, pad_hi = _pad_sizes(filt_size, pad_off)
    if filt_size == 1 and pad_off == 0:     # module skips padding entirely in this case
        pad_lo = pad_hi = 0

    hmat = jnp.asarray(_filter_matrix(h, pad_lo, pad_hi, taps, stride, pad_type))    # (Ho, H)
    wmat = jnp.asarray(_filter_matrix(w, pad_lo, pad_hi, taps, stride, pad_type).T)  # (W, Wo)
    ho = hmat.shape[0]
    wo = wmat.shape[1]

    cb = channel_block or _pick_channel_block(c, h, w, x.dtype.itemsize)
    grid = (b, c // cb)

    # TODO(synk): for very large H*W, additionally tile H (slicing Hmat rows and the
    # matching input rows per tile) so a single (Cb, H, W) plane never exceeds VMEM.
    return pl.pallas_call(
        _downsample_kernel,
        out_shape=jax.ShapeDtypeStruct((b, c, ho, wo), x.dtype),
        grid=grid,
        in_specs=[
            pl.BlockSpec((None, cb, h, w), lambda bi, ci: (bi, ci, 0, 0)),
            pl.BlockSpec((ho, h), lambda bi, ci: (0, 0)),
            pl.BlockSpec((w, wo), lambda bi, ci: (0, 0)),
        ],
        out_specs=pl.BlockSpec((None, cb, ho, wo), lambda bi, ci: (bi, ci, 0, 0)),
        compiler_params=pltpu.CompilerParams(
            dimension_semantics=("parallel", "parallel")),
    )(x, hmat, wmat)


def downsample_antialias_reference(x, *, filt_size=3, stride=2, pad_off=0,
                                   pad_type="reflect"):
    """Pure-JAX reference mirroring the PyTorch forward (pad + depthwise conv, NCHW)."""
    b, c, h, w = x.shape
    pad_lo, pad_hi = _pad_sizes(filt_size, pad_off)
    if filt_size == 1 and pad_off == 0:
        return x[:, :, ::stride, ::stride]
    mode = {"reflect": "reflect", "refl": "reflect",
            "replicate": "edge", "repl": "edge", "zero": "constant"}[pad_type]
    xp = jnp.pad(x, ((0, 0), (0, 0), (pad_lo, pad_hi), (pad_lo, pad_hi)), mode=mode)
    if filt_size == 1:
        return xp[:, :, ::stride, ::stride]
    a = np.asarray(_BINOMIAL[filt_size], dtype=np.float64)
    filt = a[:, None] * a[None, :]
    filt = (filt / filt.sum()).astype(np.float32)
    filt = jnp.broadcast_to(jnp.asarray(filt)[None, None], (c, 1, filt_size, filt_size))
    return lax.conv_general_dilated(
        xp, filt, window_strides=(stride, stride), padding="VALID",
        feature_group_count=c, dimension_numbers=("NCHW", "OIHW", "NCHW"),
        precision=lax.Precision.HIGHEST)


if __name__ == "__main__":
    # Module defaults: pad_type='reflect', filt_size=3, stride=2.
    B, C, H, W = 2, 16, 16, 16
    key = jax.random.PRNGKey(0)
    x = jax.random.normal(key, (B, C, H, W), jnp.float32)

    out = downsample_antialias_pallas(x, filt_size=3, stride=2)
    out = jax.block_until_ready(out)

    ref = downsample_antialias_reference(x, filt_size=3, stride=2)
    assert out.shape == ref.shape == (B, C, H // 2, W // 2), out.shape
    # Tolerance allows for MXU f32 pass-count differences between the Pallas
    # matmuls and XLA's reference convolution; real indexing/filter bugs would
    # produce errors of order 0.5.
    err = float(jnp.max(jnp.abs(out - ref)))
    assert err < 1e-2, f"Pallas Downsample_antialias mismatch vs reference: {err}"
    print("KERNEL_OK")
</pallas_src>

<mosaic_0001>
module attributes {stable_mosaic.version = 11 : i64} {
  func.func @_downsample_kernel(%arg0: i32, %arg1: i32, %arg2: memref<1x16x16x16xf32, #tpu.memory_space<vmem>>, %arg3: memref<8x16xf32, #tpu.memory_space<vmem>>, %arg4: memref<16x8xf32, #tpu.memory_space<vmem>>, %arg5: memref<1x16x8x8xf32, #tpu.memory_space<vmem>>) attributes {dimension_semantics = [#tpu.dimension_semantics<parallel>, #tpu.dimension_semantics<parallel>], iteration_bounds = array<i64: 2, 1>, scalar_prefetch = 0 : i64, scratch_operands = 0 : i64, tpu.core_type = #tpu.core_type<tc>, window_params = [{transform_indices = @transform_0, window_bounds = array<i64: 1, 16, 16, 16>}, {pipeline_mode = #tpu.pipeline_mode<synchronous>, transform_indices = @transform_1, window_bounds = array<i64: 8, 16>}, {pipeline_mode = #tpu.pipeline_mode<synchronous>, transform_indices = @transform_2, window_bounds = array<i64: 16, 8>}, {transform_indices = @transform_3, window_bounds = array<i64: 1, 16, 8, 8>}]} {
    %c0 = arith.constant 0 : index
    %c0_0 = arith.constant 0 : index
    %c0_1 = arith.constant 0 : index
    %c0_2 = arith.constant 0 : index
    %0 = vector.load %arg2[%c0, %c0_0, %c0_1, %c0_2] : memref<1x16x16x16xf32, #tpu.memory_space<vmem>>, vector<1x16x16x16xf32>
    %1 = vector.shape_cast %0 : vector<1x16x16x16xf32> to vector<16x16x16xf32>
    %c0_3 = arith.constant 0 : index
    %c0_4 = arith.constant 0 : index
    %2 = vector.load %arg3[%c0_3, %c0_4] : memref<8x16xf32, #tpu.memory_space<vmem>>, vector<8x16xf32>
    %c0_5 = arith.constant 0 : index
    %c0_6 = arith.constant 0 : index
    %3 = vector.load %arg4[%c0_5, %c0_6] : memref<16x8xf32, #tpu.memory_space<vmem>>, vector<16x8xf32>
    %4 = vector.shape_cast %3 : vector<16x8xf32> to vector<1x16x8xf32>
    %5 = vector.shape_cast %4 : vector<1x16x8xf32> to vector<1x16x8xf32>
    %6 = vector.broadcast %5 : vector<1x16x8xf32> to vector<16x16x8xf32>
    "tpu.trace_start"() <{level = 10 : i32, message = "chw,cwo->cho"}> : () -> ()
    %cst = arith.constant dense<0.000000e+00> : vector<16x16x8xf32>
    %7 = tpu.matmul %1, %6, %cst {dimension_numbers = #tpu.dot_dimension_numbers<[2], [1], [1], [2], [0, 0, 0, 1, 1, 2], [0], [0]>} : vector<16x16x16xf32>, vector<16x16x8xf32>, vector<16x16x8xf32> -> vector<16x16x8xf32>
    "tpu.trace_stop"() : () -> ()
    %8 = vector.shape_cast %2 : vector<8x16xf32> to vector<1x8x16xf32>
    %9 = vector.shape_cast %8 : vector<1x8x16xf32> to vector<1x8x16xf32>
    %10 = vector.broadcast %9 : vector<1x8x16xf32> to vector<16x8x16xf32>
    "tpu.trace_start"() <{level = 10 : i32, message = "coh,chw->cow"}> : () -> ()
    %cst_7 = arith.constant dense<0.000000e+00> : vector<16x8x8xf32>
    %11 = tpu.matmul %10, %7, %cst_7 {dimension_numbers = #tpu.dot_dimension_numbers<[2], [1], [1], [2], [0, 0, 0, 1, 1, 2], [0], [0]>} : vector<16x8x16xf32>, vector<16x16x8xf32>, vector<16x8x8xf32> -> vector<16x8x8xf32>
    "tpu.trace_stop"() : () -> ()
    %c0_8 = arith.constant 0 : index
    %c0_9 = arith.constant 0 : index
    %c0_10 = arith.constant 0 : index
    %c0_11 = arith.constant 0 : index
    %12 = vector.load %arg5[%c0_8, %c0_9, %c0_10, %c0_11] : memref<1x16x8x8xf32, #tpu.memory_space<vmem>>, vector<1x16x8x8xf32>
    %13 = vector.shape_cast %12 : vector<1x16x8x8xf32> to vector<16x8x8xf32>
    %14 = vector.shape_cast %11 : vector<16x8x8xf32> to vector<1x16x8x8xf32>
    tpu.vector_store %arg5[%c0_8, %c0_9, %c0_10, %c0_11], %14 {strides = array<i32>} : memref<1x16x8x8xf32, #tpu.memory_space<vmem>>, vector<1x16x8x8xf32>,
    return
  }
  func.func @transform_0(%arg0: i32, %arg1: i32) -> (i32, i32, i32, i32) {
    %c0_i32 = arith.constant 0 : i32
    %c0_i32_0 = arith.constant 0 : i32
    %c0_i32_1 = arith.constant 0 : i32
    return %arg0, %arg1, %c0_i32, %c0_i32_0 : i32, i32, i32, i32
  }
  func.func @transform_1(%arg0: i32, %arg1: i32) -> (i32, i32) {
    %c0_i32 = arith.constant 0 : i32
    %c0_i32_0 = arith.constant 0 : i32
    %c0_i32_1 = arith.constant 0 : i32
    return %c0_i32, %c0_i32_0 : i32, i32
  }
  func.func @transform_2(%arg0: i32, %arg1: i32) -> (i32, i32) {
    %c0_i32 = arith.constant 0 : i32
    %c0_i32_0 = arith.constant 0 : i32
    %c0_i32_1 = arith.constant 0 : i32
    return %c0_i32, %c0_i32_0 : i32, i32
  }
  func.func @transform_3(%arg0: i32, %arg1: i32) -> (i32, i32, i32, i32) {
    %c0_i32 = arith.constant 0 : i32
    %c0_i32_0 = arith.constant 0 : i32
    %c0_i32_1 = arith.constant 0 : i32
    return %arg0, %arg1, %c0_i32, %c0_i32_0 : i32, i32, i32, i32
  }
}

</mosaic_0001>

<bundles_post_ra>
// kernel: tpu_custom_call.1
= control target key start
LH: loop header
LB: loop body
LE: loop exit
PB: predicated region body
PF: predicated region fallthrough
CT: control target
= control target key end

     0   :  { %8 = vsyncpa [#allocation3], 0  ;;  %s3721_s0 = inlined_call_operand.hbm [shape: f32[2,16,16,16], index: 0, kind: input, shape index: {}]   ;;  %s3722_s1 = inlined_call_operand.vmem [shape: f32[8,16], index: 1, kind: input, shape index: {}]   ;;  %s3723_s2 = inlined_call_operand.vmem [shape: f32[16,8], index: 2, kind: input, shape index: {}]   ;;  %s3724_s3 = inlined_call_operand.vmem [shape: f32[2,16,8,8], index: 3, kind: output, shape index: {}]  }
   0x1   :  { %10 = vsyncpa [#allocation3 + $0x1], 0  ;;  %s3350_s12 = smov 0   ;;  %s3352_s13 = smov 0  }
   0x2   :  { %s3354_s14 = smov 0   ;;  %s3356_s15 = smov 0  }
   0x3   :  { %s3358_s16 = smov 0   ;;  %s3360_s17 = smov 0  }
   0x4 LB: > { %s2787_s18 = sadd.s32 4294967295, %s3323_s17   ;;  %s28_s19 = sadd.s32 1, %s3319_s16  ;;  %s3323_s17 = sphi %s3360_s17, %s16_s17   ;;  %s3319_s16 = sphi %s3358_s16, %s3732_s16   ;;  %s3315_s15 = sphi %s3356_s15, %s3731_s15   ;;  %s3311_s14 = sphi %s3354_s14, %s3730_s14   ;;  %s3307_s13 = sphi %s3352_s13, %s3729_s13   ;;  %s3303_s12 = sphi %s3350_s12, %s3728_s12  }
   0x5   : > { %p30_p0 = scmp.ge.s32.totalorder %s28_s19, 2  ;;  %s37_s20 = sadd.s32 1, %s3311_s14 }
   0x6   : > { %p44_p1 = scmp.ne.s32.totalorder %s3311_s14, %s3307_s13  ;;  %p45_p2 = scmp.eq.s32.totalorder %s3323_s17, 0 }
   0x7   : > { %s3734_s19 = smov (%p30_p0, %s28_s19), 0  ;;  %p50_p4 = scmp.ne.s32.totalorder %s3307_s13, %s3303_s12 }
   0x8   : > { %p3386_p3 = por %p45_p2, %p44_p1  ;;  %s32_s22 = ssub.s32 %s3319_s16, %s3734_s19 }
   0x9   : > { %p51_p5 = scmp.eq.s32.totalorder %s2787_s18, 0  ;;  %p35_p6 = scmp.eq.s32.totalorder %s32_s22, 0 }
   0xa   : > { %p3192_p8 = scmp.lt.s32.totalorder %s3323_s17, 2  ;;  %s150_s25 = sand.u32 1, %s3311_s14  }
   0xb   : > { %p3393_p7 = por %p51_p5, %p50_p4  ;;  %s2848_s26 = sshll.u32 %s3319_s16, 12 }
   0xc   : > { %s3399_s24 = scalar_select %p35_p6, %s3311_s14, %s37_s20  }
   0xd   : > { %s2791_s27 = sshll.u32 %s150_s25, 8  ;;  %s163_s30 = scalar_lea.hbm %s3721_s0, %s2848_s26 }
   0xe   : > { %s154_s4 = scalar_lea.vmem [#allocation2], %s2791_s27  ;;  %p3408_p9 = pnand %p3192_p8, %p3386_p3 }
   0xf   : > { %s164_s5 = sshll.u32 %s154_s4, 4  ;;  %s151_s7 = scalar_lea.sflag [#allocation3], %s150_s25  ;;  %s165_s5 = int_to_ptr.vmem [resolvable:$true] %s164_s5 }
  0x10   : > { %p3247_p10 = pneg %p3408_p9  ;;  %s3258_s8 = scalar_lea.vmem %s165_s5, 4096 }
  0x11   : > { %p3259_p11 = scmp.ne.s32.totalorder %s165_s5, %s3258_s8  ;;  %s3325_s9 = smov [#allocation2]  }
  0x12   : > { %s3263_s10 = sshll.u32 %s3325_s9, 4  ;;  %s3264_s10 = int_to_ptr.vmem [resolvable:$false] %s3263_s10 }
  0x13   : > { %p3261_p12 = pnand %p3259_p11, %p3247_p10  ;;  %s3265_s11 = scalar_lea.vmem %s3264_s10, 8192 }
  0x14   : > { %p3266_p0 = scmp.lt.s32.totalorder %s165_s5, %s3264_s10  ;;  %p3267_p1 = scmp.lt.s32.totalorder %s3265_s11, %s3258_s8 }
  0x15   : > { %p3262_p13 = pneg %p3261_p12 }
  0x16   : > { %p3268_p2 = por %p3267_p1, %p3266_p0 }
  0x18   : > { %p3269_p3 = pnand %p3268_p2, %p3262_p13 }
  0x1a   : > { %3272 = shalt.err (!%p3269_p3)
}
  0x1b   : > { %s3326_s12 = smov 128   ;;  %s3327_s18 = smov 8  }
  0x1c   : > { %3191 = dma.hbm_to_vmem [thread:$0]  (!%p3408_p9), %s163_s30, 4096, %s165_s5, %s151_s7, %s3326_s12, %s3326_s12, %s3327_s18  }
  0x1d   : > { %p2794_p4 = scmp.ge.s32.totalorder %s3323_s17, 1  ;;  %p172_p5 = scmp.lt.s32.totalorder %s3323_s17, 3 }
  0x1f   : > { %p173_p6 = pnand %p2794_p4, %p172_p5 }
  0x20   : > { %s178_s20 = sand.u32 (!%p173_p6), 1, %s3307_s13  }
  0x21   : > { %176 = sbr.rel (%p173_p6) target bundleno = 478 (0x1de), region = 32  ;;  %s2795_s21 = sshll.u32 (!%p173_p6), %s178_s20, 8 }
  0x22   : > { %s179_s22 = scalar_lea.sflag (!%p173_p6), [#allocation3], %s178_s20  ;;  %s3419_s25 = scalar_lea.vmem (!%p173_p6), [#allocation2], %s2795_s21 }
  0x26   : > { %3298 = dma.done.wait (%p3393_p7), %s179_s22, 4096  }
  0x27   : > { %3300 = vsyncadd (%p3393_p7), %s179_s22, 4294963200  ;;  %v3428_v0 = vld [vmem:[%s3723_s2 + $0x8] sm:$0xff]  ;;  %v3433_v1 = vld [vmem:[%s3723_s2] sm:$0xff]  ;;  %vm255_vm0 = vcmask 130048   ;;  %v3328_v34 = vmov 0.0   ;;  %vm3329_vm1 = vmmov 0  }
  0x28   : > { %2962 = vmatprep.subr.mxu0 %v3428_v0  ;;  %2969 = vmatprep.subr.mxu1 %v3428_v0  ;;  %v220_v2 = vld [vmem:[%s3419_s25] sm:$0xff]  ;;  %v222_v3 = vld [vmem:[%s3419_s25 + $0x10] sm:$0xff]  ;;  %v221_v4 = vld [vmem:[%s3419_s25 + $0x8] sm:$0xff]  ;;  %p211_p7 = scmp.lt.s32.totalorder %s3315_s15, 1  ;;  %vm2675_vm2 = vcmask 64512  }
  0x29   : > { %2963 = vmatpush3.msra.mxu0 %v3428_v0  ;;  %2970 = vmatpush3.msra.mxu1 %v3428_v0  ;;  %v223_v5 = vld [vmem:[%s3419_s25 + $0x18] sm:$0xff]  ;;  %v224_v6 = vld [vmem:[%s3419_s25 + $0x20] sm:$0xff]  ;;  %v226_v7 = vld [vmem:[%s3419_s25 + $0x30] sm:$0xff] }
  0x2a   : > { %2964 = vmatprep.subr.mxu0 %v3433_v1  ;;  %2971 = vmatprep.subr.mxu1 %v3433_v1  ;;  %v225_v8 = vld [vmem:[%s3419_s25 + $0x28] sm:$0xff]  ;;  %v227_v9 = vld [vmem:[%s3419_s25 + $0x38] sm:$0xff]  ;;  %v228_v10 = vld [vmem:[%s3419_s25 + $0x40] sm:$0xff]  ;;  %s3736_s15 = smov (!%p211_p7, %s3315_s15), 1 }
  0x2b   : > { %2965 = vmatpush3.msra.mxu0 %v3433_v1  ;;  %2966 = vmatprep.mubr.msk.f32.mxu0 %vm255_vm0, %v220_v2  ;;  %v230_v11 = vld [vmem:[%s3419_s25 + $0x50] sm:$0xff]  ;;  %v229_v12 = vld [vmem:[%s3419_s25 + $0x48] sm:$0xff]  ;;  %v231_v13 = vld [vmem:[%s3419_s25 + $0x58] sm:$0xff]  ;;  %s2849_s4 = sshll.u32 %s3736_s15, 7 }
  0x2c   : > { %2972 = vmatpush3.msra.mxu1 %v3433_v1  ;;  %2973 = vmatprep.mubr.msk.f32.mxu1 %vm255_vm0, %v222_v3  ;;  %v232_v14 = vld [vmem:[%s3419_s25 + $0x60] sm:$0xff]  ;;  %v234_v15 = vld [vmem:[%s3419_s25 + $0x70] sm:$0xff]  ;;  %v233_v16 = vld [vmem:[%s3419_s25 + $0x68] sm:$0xff]  ;;  %s3669_s7 = scalar_lea.vmem %s3724_s3, %s2849_s4 }
  0x2d   : > { %2967 = vmatmul.mubr.msk.f32.vlgmr.msra.gmra.mxu0 %vm255_vm0, %v221_v4  ;;  %2974 = vmatmul.mubr.msk.f32.vlgmr.msra.gmra.mxu1 %vm255_vm0, %v223_v5  ;;  %v235_v17 = vld [vmem:[%s3419_s25 + $0x78] sm:$0xff]  ;;  %v236_v18 = vld [vmem:[%s3419_s25 + $0x80] sm:$0xff]  ;;  %v238_v19 = vld [vmem:[%s3419_s25 + $0x90] sm:$0xff] }
  0x2e   : > { %2976 = vmatprep.subr.mxu0 %v3428_v0  ;;  %2983 = vmatprep.subr.mxu1 %v3428_v0  ;;  %v237_v20 = vld [vmem:[%s3419_s25 + $0x88] sm:$0xff]  ;;  %v239_v21 = vld [vmem:[%s3419_s25 + $0x98] sm:$0xff]  ;;  %v240_v22 = vld [vmem:[%s3419_s25 + $0xa0] sm:$0xff] }
  0x2f   : > { %2977 = vmatpush3.msra.mxu0 %v3428_v0  ;;  %2984 = vmatpush3.msra.mxu1 %v3428_v0  ;;  %v242_v23 = vld [vmem:[%s3419_s25 + $0xb0] sm:$0xff]  ;;  %v241_v24 = vld [vmem:[%s3419_s25 + $0xa8] sm:$0xff]  ;;  %v243_v25 = vld [vmem:[%s3419_s25 + $0xb8] sm:$0xff] }
  0x30   : > { %2978 = vmatprep.subr.mxu0 %v3433_v1  ;;  %2985 = vmatprep.subr.mxu1 %v3433_v1  ;;  %v244_v26 = vld [vmem:[%s3419_s25 + $0xc0] sm:$0xff]  ;;  %v246_v27 = vld [vmem:[%s3419_s25 + $0xd0] sm:$0xff]  ;;  %v245_v28 = vld [vmem:[%s3419_s25 + $0xc8] sm:$0xff] }
  0x31   : > { %2979 = vmatpush3.msra.mxu0 %v3433_v1  ;;  %2980 = vmatprep.mubr.msk.f32.mxu0 %vm255_vm0, %v224_v6  ;;  %v247_v29 = vld [vmem:[%s3419_s25 + $0xd8] sm:$0xff]  ;;  %v248_v30 = vld [vmem:[%s3419_s25 + $0xe0] sm:$0xff]  ;;  %v250_v31 = vld [vmem:[%s3419_s25 + $0xf0] sm:$0xff] }
  0x32   : > { %2986 = vmatpush3.msra.mxu1 %v3433_v1  ;;  %2987 = vmatprep.mubr.msk.f32.mxu1 %vm255_vm0, %v226_v7  ;;  %v249_v32 = vld [vmem:[%s3419_s25 + $0xe8] sm:$0xff]  ;;  %v251_v33 = vld [vmem:[%s3419_s25 + $0xf8] sm:$0xff]  ;;  %v3572_v37 = vld [vmem:[%s3722_s1] sm:$0xff] }
  0x33   : > { %2981 = vmatmul.mubr.msk.f32.vlgmr.msra.gmra.mxu0 %vm255_vm0, %v225_v8  ;;  %2988 = vmatmul.mubr.msk.f32.vlgmr.msra.gmra.mxu1 %vm255_vm0, %v227_v9 }
  0x34   : > { %2990 = vmatprep.subr.mxu0 %v3428_v0  ;;  %2997 = vmatprep.subr.mxu1 %v3428_v0 }
  0x35   : > { %2991 = vmatpush3.msra.mxu0 %v3428_v0  ;;  %2998 = vmatpush3.msra.mxu1 %v3428_v0 }
  0x36   : > { %2992 = vmatprep.subr.mxu0 %v3433_v1  ;;  %2999 = vmatprep.subr.mxu1 %v3433_v1 }
  0x37   : > { %2993 = vmatpush3.msra.mxu0 %v3433_v1  ;;  %2994 = vmatprep.mubr.msk.f32.mxu0 %vm255_vm0, %v228_v10 }
  0x38   : > { %3000 = vmatpush3.msra.mxu1 %v3433_v1  ;;  %3001 = vmatprep.mubr.msk.f32.mxu1 %vm255_vm0, %v230_v11 }
  0x39   : > { %2995 = vmatmul.mubr.msk.f32.vlgmr.msra.gmra.mxu0 %vm255_vm0, %v229_v12  ;;  %3002 = vmatmul.mubr.msk.f32.vlgmr.msra.gmra.mxu1 %vm255_vm0, %v231_v13 }
  0x3a   : > { %3004 = vmatprep.subr.mxu0 %v3428_v0  ;;  %3011 = vmatprep.subr.mxu1 %v3428_v0 }
  0x3b   : > { %3005 = vmatpush3.msra.mxu0 %v3428_v0  ;;  %3012 = vmatpush3.msra.mxu1 %v3428_v0 }
  0x3c   : > { %3006 = vmatprep.subr.mxu0 %v3433_v1  ;;  %3013 = vmatprep.subr.mxu1 %v3433_v1 }
  0x3d   : > { %3007 = vmatpush3.msra.mxu0 %v3433_v1  ;;  %3008 = vmatprep.mubr.msk.f32.mxu0 %vm255_vm0, %v232_v14 }
  0x3e   : > { %3014 = vmatpush3.msra.mxu1 %v3433_v1  ;;  %3015 = vmatprep.mubr.msk.f32.mxu1 %vm255_vm0, %v234_v15 }
  0x3f   : > { %3009 = vmatmul.mubr.msk.f32.vlgmr.msra.gmra.mxu0 %vm255_vm0, %v233_v16  ;;  %3016 = vmatmul.mubr.msk.f32.vlgmr.msra.gmra.mxu1 %vm255_vm0, %v235_v17 }
  0x40   : > { %3018 = vmatprep.subr.mxu0 %v3428_v0  ;;  %3025 = vmatprep.subr.mxu1 %v3428_v0 }
  0x41   : > { %3019 = vmatpush3.msra.mxu0 %v3428_v0  ;;  %3026 = vmatpush3.msra.mxu1 %v3428_v0 }
  0x42   : > { %3020 = vmatprep.subr.mxu0 %v3433_v1  ;;  %3027 = vmatprep.subr.mxu1 %v3433_v1 }
  0x43   : > { %3021 = vmatpush3.msra.mxu0 %v3433_v1  ;;  %3022 = vmatprep.mubr.msk.f32.mxu0 %vm255_vm0, %v236_v18 }
  0x44   : > { %3028 = vmatpush3.msra.mxu1 %v3433_v1  ;;  %3029 = vmatprep.mubr.msk.f32.mxu1 %vm255_vm0, %v238_v19 }
  0x45   : > { %3023 = vmatmul.mubr.msk.f32.vlgmr.msra.gmra.mxu0 %vm255_vm0, %v237_v20  ;;  %3030 = vmatmul.mubr.msk.f32.vlgmr.msra.gmra.mxu1 %vm255_vm0, %v239_v21 }
  0x46   : > { %3032 = vmatprep.subr.mxu0 %v3428_v0  ;;  %3039 = vmatprep.subr.mxu1 %v3428_v0 }
  0x47   : > { %3033 = vmatpush3.msra.mxu0 %v3428_v0  ;;  %3040 = vmatpush3.msra.mxu1 %v3428_v0 }
  0x48   : > { %3034 = vmatprep.subr.mxu0 %v3433_v1  ;;  %3041 = vmatprep.subr.mxu1 %v3433_v1 }
  0x49   : > { %3035 = vmatpush3.msra.mxu0 %v3433_v1  ;;  %3036 = vmatprep.mubr.msk.f32.mxu0 %vm255_vm0, %v240_v22 }
  0x4a   : > { %3042 = vmatpush3.msra.mxu1 %v3433_v1  ;;  %3043 = vmatprep.mubr.msk.f32.mxu1 %vm255_vm0, %v242_v23 }
  0x4b   : > { %3037 = vmatmul.mubr.msk.f32.vlgmr.msra.gmra.mxu0 %vm255_vm0, %v241_v24  ;;  %3044 = vmatmul.mubr.msk.f32.vlgmr.msra.gmra.mxu1 %vm255_vm0, %v243_v25 }
  0x4c   : > { %3046 = vmatprep.subr.mxu0 %v3428_v0  ;;  %3053 = vmatprep.subr.mxu1 %v3428_v0 }
  0x4d   : > { %3047 = vmatpush3.msra.mxu0 %v3428_v0  ;;  %3054 = vmatpush3.msra.mxu1 %v3428_v0 }
  0x4e   : > { %3048 = vmatprep.subr.mxu0 %v3433_v1  ;;  %3055 = vmatprep.subr.mxu1 %v3433_v1 }
  0x4f   : > { %3049 = vmatpush3.msra.mxu0 %v3433_v1  ;;  %3050 = vmatprep.mubr.msk.f32.mxu0 %vm255_vm0, %v244_v26 }
  0x50   : > { %3056 = vmatpush3.msra.mxu1 %v3433_v1  ;;  %3057 = vmatprep.mubr.msk.f32.mxu1 %vm255_vm0, %v246_v27 }
  0x51   : > { %3051 = vmatmul.mubr.msk.f32.vlgmr.msra.gmra.mxu0 %vm255_vm0, %v245_v28  ;;  %3058 = vmatmul.mubr.msk.f32.vlgmr.msra.gmra.mxu1 %vm255_vm0, %v247_v29 }
  0x52   : > { %3060 = vmatprep.subr.mxu0 %v3428_v0  ;;  %3067 = vmatprep.subr.mxu1 %v3428_v0 }
  0x53   : > { %3061 = vmatpush3.msra.mxu0 %v3428_v0  ;;  %3068 = vmatpush3.msra.mxu1 %v3428_v0 }
  0x54   : > { %3062 = vmatprep.subr.mxu0 %v3433_v1  ;;  %3069 = vmatprep.subr.mxu1 %v3433_v1 }
  0x55   : > { %3063 = vmatpush3.msra.mxu0 %v3433_v1  ;;  %3064 = vmatprep.mubr.msk.f32.mxu0 %vm255_vm0, %v248_v30 }
  0x56   : > { %3070 = vmatpush3.msra.mxu1 %v3433_v1  ;;  %3071 = vmatprep.mubr.msk.f32.mxu1 %vm255_vm0, %v250_v31 }
  0x57   : > { %3065 = vmatmul.mubr.msk.f32.vlgmr.msra.gmra.mxu0 %vm255_vm0, %v249_v32  ;;  %3072 = vmatmul.mubr.msk.f32.vlgmr.msra.gmra.mxu1 %vm255_vm0, %v251_v33 }
  0x58   : > { %3074 = vmatprep.subr.mxu0 %v3328_v34  ;;  %3081 = vmatprep.subr.mxu1 %v3328_v34 }
  0x59   : > { %3078 = vmatprep.mubr.msk.f32.mxu0 %vm3329_vm1, %v3328_v34  ;;  %3085 = vmatprep.mubr.msk.f32.mxu1 %vm3329_vm1, %v3328_v34 }
  0xed   : > { %v2968_v35 = vpop.f32.mrf.mxu0  ;;  %v2975_v36 = vpop.f32.mrf.mxu1 }
  0xee   : > { %3075 = vmatpush3.msra.mxu0 %v2968_v35  ;;  %3082 = vmatpush3.msra.mxu1 %v2975_v36 }
  0xef   : > { %v328_v38 = vpop.f32.mrf.mxu0  ;;  %v409_v39 = vpop.f32.mrf.mxu1  ;;  %3076 = vmatprep.subr.mxu0 %v3328_v34  ;;  %3083 = vmatprep.subr.mxu1 %v3328_v34 }
  0xf0   : > { %3077 = vmatpush3.msra.mxu0 %v328_v38  ;;  %3084 = vmatpush3.msra.mxu1 %v409_v39 }
  0xf1   : > { %3079 = vmatmul.mubr.msk.f32.vlgmr.msra.gmra.mxu0 %vm255_vm0, %v3572_v37  ;;  %3086 = vmatmul.mubr.msk.f32.vlgmr.msra.gmra.mxu1 %vm255_vm0, %v3572_v37 }
  0xf2   : > { %3088 = vmatprep.subr.mxu0 %v3328_v34  ;;  %3095 = vmatprep.subr.mxu1 %v3328_v34 }
  0xf3   : > { %v2982_v40 = vpop.f32.mrf.mxu0  ;;  %v2989_v41 = vpop.f32.mrf.mxu1  ;;  %3092 = vmatprep.mubr.msk.f32.mxu0 %vm3329_vm1, %v3328_v34  ;;  %3099 = vmatprep.mubr.msk.f32.mxu1 %vm3329_vm1, %v3328_v34 }
  0xf4   : > { %3089 = vmatpush3.msra.mxu0 %v2982_v40  ;;  %3096 = vmatpush3.msra.mxu1 %v2989_v41 }
  0xf5   : > { %v490_v42 = vpop.f32.mrf.mxu0  ;;  %v571_v43 = vpop.f32.mrf.mxu1  ;;  %3090 = vmatprep.subr.mxu0 %v3328_v34  ;;  %3097 = vmatprep.subr.mxu1 %v3328_v34 }
  0xf6   : > { %3091 = vmatpush3.msra.mxu0 %v490_v42  ;;  %3098 = vmatpush3.msra.mxu1 %v571_v43 }
  0xf7   : > { %3093 = vmatmul.mubr.msk.f32.vlgmr.msra.gmra.mxu0 %vm255_vm0, %v3572_v37  ;;  %3100 = vmatmul.mubr.msk.f32.vlgmr.msra.gmra.mxu1 %vm255_vm0, %v3572_v37 }
  0xf8   : > { %3102 = vmatprep.subr.mxu0 %v3328_v34  ;;  %3109 = vmatprep.subr.mxu1 %v3328_v34 }
  0xf9   : > { %v2996_v44 = vpop.f32.mrf.mxu0  ;;  %v3003_v45 = vpop.f32.mrf.mxu1  ;;  %3106 = vmatprep.mubr.msk.f32.mxu0 %vm3329_vm1, %v3328_v34  ;;  %3113 = vmatprep.mubr.msk.f32.mxu1 %vm3329_vm1, %v3328_v34 }
  0xfa   : > { %3103 = vmatpush3.msra.mxu0 %v2996_v44  ;;  %3110 = vmatpush3.msra.mxu1 %v3003_v45 }
  0xfb   : > { %v652_v46 = vpop.f32.mrf.mxu0  ;;  %v733_v47 = vpop.f32.mrf.mxu1  ;;  %3104 = vmatprep.subr.mxu0 %v3328_v34  ;;  %3111 = vmatprep.subr.mxu1 %v3328_v34 }
  0xfc   : > { %3105 = vmatpush3.msra.mxu0 %v652_v46  ;;  %3112 = vmatpush3.msra.mxu1 %v733_v47 }
  0xfd   : > { %3107 = vmatmul.mubr.msk.f32.vlgmr.msra.gmra.mxu0 %vm255_vm0, %v3572_v37  ;;  %3114 = vmatmul.mubr.msk.f32.vlgmr.msra.gmra.mxu1 %vm255_vm0, %v3572_v37 }
  0xfe   : > { %3116 = vmatprep.subr.mxu0 %v3328_v34  ;;  %3123 = vmatprep.subr.mxu1 %v3328_v34 }
  0xff   : > { %v3010_v48 = vpop.f32.mrf.mxu0  ;;  %v3017_v49 = vpop.f32.mrf.mxu1  ;;  %3120 = vmatprep.mubr.msk.f32.mxu0 %vm3329_vm1, %v3328_v34  ;;  %3127 = vmatprep.mubr.msk.f32.mxu1 %vm3329_vm1, %v3328_v34 }
 0x100   : > { %3117 = vmatpush3.msra.mxu0 %v3010_v48  ;;  %3124 = vmatpush3.msra.mxu1 %v3017_v49 }
 0x101   : > { %v814_v50 = vpop.f32.mrf.mxu0  ;;  %v895_v51 = vpop.f32.mrf.mxu1  ;;  %3118 = vmatprep.subr.mxu0 %v3328_v34  ;;  %3125 = vmatprep.subr.mxu1 %v3328_v34 }
 0x102   : > { %3119 = vmatpush3.msra.mxu0 %v814_v50  ;;  %3126 = vmatpush3.msra.mxu1 %v895_v51 }
 0x103   : > { %3121 = vmatmul.mubr.msk.f32.vlgmr.msra.gmra.mxu0 %vm255_vm0, %v3572_v37  ;;  %3128 = vmatmul.mubr.msk.f32.vlgmr.msra.gmra.mxu1 %vm255_vm0, %v3572_v37 }
 0x104   : > { %3130 = vmatprep.subr.mxu0 %v3328_v34  ;;  %3137 = vmatprep.subr.mxu1 %v3328_v34 }
 0x105   : > { %v3024_v52 = vpop.f32.mrf.mxu0  ;;  %v3031_v53 = vpop.f32.mrf.mxu1  ;;  %3134 = vmatprep.mubr.msk.f32.mxu0 %vm3329_vm1, %v3328_v34  ;;  %3141 = vmatprep.mubr.msk.f32.mxu1 %vm3329_vm1, %v3328_v34 }
 0x106   : > { %3131 = vmatpush3.msra.mxu0 %v3024_v52  ;;  %3138 = vmatpush3.msra.mxu1 %v3031_v53 }
 0x107   : > { %v976_v54 = vpop.f32.mrf.mxu0  ;;  %v1057_v55 = vpop.f32.mrf.mxu1  ;;  %3132 = vmatprep.subr.mxu0 %v3328_v34  ;;  %3139 = vmatprep.subr.mxu1 %v3328_v34 }
 0x108   : > { %3133 = vmatpush3.msra.mxu0 %v976_v54  ;;  %3140 = vmatpush3.msra.mxu1 %v1057_v55 }
 0x109   : > { %3135 = vmatmul.mubr.msk.f32.vlgmr.msra.gmra.mxu0 %vm255_vm0, %v3572_v37  ;;  %3142 = vmatmul.mubr.msk.f32.vlgmr.msra.gmra.mxu1 %vm255_vm0, %v3572_v37 }
 0x10a   : > { %3144 = vmatprep.subr.mxu0 %v3328_v34  ;;  %3151 = vmatprep.subr.mxu1 %v3328_v34 }
 0x10b   : > { %v3038_v56 = vpop.f32.mrf.mxu0  ;;  %v3045_v57 = vpop.f32.mrf.mxu1  ;;  %3148 = vmatprep.mubr.msk.f32.mxu0 %vm3329_vm1, %v3328_v34  ;;  %3155 = vmatprep.mubr.msk.f32.mxu1 %vm3329_vm1, %v3328_v34 }
 0x10c   : > { %3145 = vmatpush3.msra.mxu0 %v3038_v56  ;;  %3152 = vmatpush3.msra.mxu1 %v3045_v57 }
 0x10d   : > { %v1138_v58 = vpop.f32.mrf.mxu0  ;;  %v1219_v59 = vpop.f32.mrf.mxu1  ;;  %3146 = vmatprep.subr.mxu0 %v3328_v34  ;;  %3153 = vmatprep.subr.mxu1 %v3328_v34 }
 0x10e   : > { %3147 = vmatpush3.msra.mxu0 %v1138_v58  ;;  %3154 = vmatpush3.msra.mxu1 %v1219_v59 }
 0x10f   : > { %3149 = vmatmul.mubr.msk.f32.vlgmr.msra.gmra.mxu0 %vm255_vm0, %v3572_v37  ;;  %3156 = vmatmul.mubr.msk.f32.vlgmr.msra.gmra.mxu1 %vm255_vm0, %v3572_v37 }
 0x110   : > { %3158 = vmatprep.subr.mxu0 %v3328_v34  ;;  %3165 = vmatprep.subr.mxu1 %v3328_v34 }
 0x111   : > { %v3052_v60 = vpop.f32.mrf.mxu0  ;;  %v3059_v61 = vpop.f32.mrf.mxu1  ;;  %3162 = vmatprep.mubr.msk.f32.mxu0 %vm3329_vm1, %v3328_v34  ;;  %3169 = vmatprep.mubr.msk.f32.mxu1 %vm3329_vm1, %v3328_v34 }
 0x112   : > { %3159 = vmatpush3.msra.mxu0 %v3052_v60  ;;  %3166 = vmatpush3.msra.mxu1 %v3059_v61 }
 0x113   : > { %v1300_v62 = vpop.f32.mrf.mxu0  ;;  %v1381_v63 = vpop.f32.mrf.mxu1  ;;  %3160 = vmatprep.subr.mxu0 %v3328_v34  ;;  %3167 = vmatprep.subr.mxu1 %v3328_v34 }
 0x114   : > { %3161 = vmatpush3.msra.mxu0 %v1300_v62  ;;  %3168 = vmatpush3.msra.mxu1 %v1381_v63 }
 0x115   : > { %3163 = vmatmul.mubr.msk.f32.vlgmr.msra.gmra.mxu0 %vm255_vm0, %v3572_v37  ;;  %3170 = vmatmul.mubr.msk.f32.vlgmr.msra.gmra.mxu1 %vm255_vm0, %v3572_v37 }
 0x116   : > { %3172 = vmatprep.subr.mxu0 %v3328_v34  ;;  %3179 = vmatprep.subr.mxu1 %v3328_v34 }
 0x117   : > { %v3066_v0 = vpop.f32.mrf.mxu0  ;;  %v3073_v1 = vpop.f32.mrf.mxu1  ;;  %3176 = vmatprep.mubr.msk.f32.mxu0 %vm3329_vm1, %v3328_v34  ;;  %3183 = vmatprep.mubr.msk.f32.mxu1 %vm3329_vm1, %v3328_v34 }
 0x118   : > { %3173 = vmatpush3.msra.mxu0 %v3066_v0  ;;  %3180 = vmatpush3.msra.mxu1 %v3073_v1 }
 0x119   : > { %v1462_v2 = vpop.f32.mrf.mxu0  ;;  %v1543_v3 = vpop.f32.mrf.mxu1  ;;  %3174 = vmatprep.subr.mxu0 %v3328_v34  ;;  %3181 = vmatprep.subr.mxu1 %v3328_v34 }
 0x11a   : > { %3175 = vmatpush3.msra.mxu0 %v1462_v2  ;;  %3182 = vmatpush3.msra.mxu1 %v1543_v3 }
 0x11b   : > { %3177 = vmatmul.mubr.msk.f32.vlgmr.msra.gmra.mxu0 %vm255_vm0, %v3572_v37  ;;  %3184 = vmatmul.mubr.msk.f32.vlgmr.msra.gmra.mxu1 %vm255_vm0, %v3572_v37 }
 0x1b1   : > { %v1621_v4 = vpop.f32.mrf.mxu0  ;;  %v1691_v5 = vpop.f32.mrf.mxu1 }
 0x1b2   : > { %2676 = vst.msk [vmem:[%s3669_s7] sm:$0xff] %vm2675_vm2, %v1621_v4  ;;  %2677 = vst.msk [vmem:[%s3669_s7 + $0x8] sm:$0xff] %vm2675_vm2, %v1691_v5 }
 0x1b3   : > { %v3080_v6 = vpop.f32.mrf.mxu0  ;;  %v3087_v7 = vpop.f32.mrf.mxu1 }
 0x1b7   : > { %v1761_v8 = vpop.f32.mrf.mxu0  ;;  %v1831_v9 = vpop.f32.mrf.mxu1 }
 0x1b8   : > { %2678 = vst.msk [vmem:[%s3669_s7 + $0x10] sm:$0xff] %vm2675_vm2, %v1761_v8  ;;  %2679 = vst.msk [vmem:[%s3669_s7 + $0x18] sm:$0xff] %vm2675_vm2, %v1831_v9 }
 0x1b9   : > { %v3094_v10 = vpop.f32.mrf.mxu0  ;;  %v3101_v11 = vpop.f32.mrf.mxu1 }
 0x1bd   : > { %v1901_v12 = vpop.f32.mrf.mxu0  ;;  %v1971_v13 = vpop.f32.mrf.mxu1 }
 0x1be   : > { %2680 = vst.msk [vmem:[%s3669_s7 + $0x20] sm:$0xff] %vm2675_vm2, %v1901_v12  ;;  %2681 = vst.msk [vmem:[%s3669_s7 + $0x28] sm:$0xff] %vm2675_vm2, %v1971_v13 }
 0x1bf   : > { %v3108_v14 = vpop.f32.mrf.mxu0  ;;  %v3115_v15 = vpop.f32.mrf.mxu1 }
 0x1c3   : > { %v2041_v16 = vpop.f32.mrf.mxu0  ;;  %v2111_v17 = vpop.f32.mrf.mxu1 }
 0x1c4   : > { %2682 = vst.msk [vmem:[%s3669_s7 + $0x30] sm:$0xff] %vm2675_vm2, %v2041_v16  ;;  %2683 = vst.msk [vmem:[%s3669_s7 + $0x38] sm:$0xff] %vm2675_vm2, %v2111_v17 }
 0x1c5   : > { %v3122_v18 = vpop.f32.mrf.mxu0  ;;  %v3129_v19 = vpop.f32.mrf.mxu1 }
 0x1c9   : > { %v2181_v20 = vpop.f32.mrf.mxu0  ;;  %v2251_v21 = vpop.f32.mrf.mxu1 }
 0x1ca   : > { %2684 = vst.msk [vmem:[%s3669_s7 + $0x40] sm:$0xff] %vm2675_vm2, %v2181_v20  ;;  %2685 = vst.msk [vmem:[%s3669_s7 + $0x48] sm:$0xff] %vm2675_vm2, %v2251_v21 }
 0x1cb   : > { %v3136_v22 = vpop.f32.mrf.mxu0  ;;  %v3143_v23 = vpop.f32.mrf.mxu1 }
 0x1cf   : > { %v2321_v24 = vpop.f32.mrf.mxu0  ;;  %v2391_v25 = vpop.f32.mrf.mxu1 }
 0x1d0   : > { %2686 = vst.msk [vmem:[%s3669_s7 + $0x50] sm:$0xff] %vm2675_vm2, %v2321_v24  ;;  %2687 = vst.msk [vmem:[%s3669_s7 + $0x58] sm:$0xff] %vm2675_vm2, %v2391_v25 }
 0x1d1   : > { %v3150_v26 = vpop.f32.mrf.mxu0  ;;  %v3157_v27 = vpop.f32.mrf.mxu1 }
 0x1d5   : > { %v2461_v28 = vpop.f32.mrf.mxu0  ;;  %v2531_v29 = vpop.f32.mrf.mxu1 }
 0x1d6   : > { %2688 = vst.msk [vmem:[%s3669_s7 + $0x60] sm:$0xff] %vm2675_vm2, %v2461_v28  ;;  %2689 = vst.msk [vmem:[%s3669_s7 + $0x68] sm:$0xff] %vm2675_vm2, %v2531_v29 }
 0x1d7   : > { %v3164_v30 = vpop.f32.mrf.mxu0  ;;  %v3171_v31 = vpop.f32.mrf.mxu1 }
 0x1db   : > { %v2601_v32 = vpop.f32.mrf.mxu0  ;;  %v2671_v33 = vpop.f32.mrf.mxu1 }
 0x1dc   : > { %2690 = vst.msk [vmem:[%s3669_s7 + $0x70] sm:$0xff] %vm2675_vm2, %v2601_v32  ;;  %2691 = vst.msk [vmem:[%s3669_s7 + $0x78] sm:$0xff] %vm2675_vm2, %v2671_v33 }
 0x1dd   : > { %v3178_v34 = vpop.f32.mrf.mxu0  ;;  %v3185_v35 = vpop.f32.mrf.mxu1 }
 0x1de PF: > { %s16_s17 = sadd.s32 1, %s3323_s17   ;;  %s3728_s12 = smov %s3307_s13 }
 0x1df   : > { %p13_p8 = scmp.ge.s32.totalorder %s16_s17, 4   ;;  %s3729_s13 = smov %s3311_s14 }
 0x1e0   : > { %s3730_s14 = smov %s3399_s24  ;;  %s3731_s15 = smov %s3319_s16 }
 0x1e1   : > { %s3732_s16 = smov %s3734_s19  ;;  %15 = sbr.rel (!%p13_p8) target bundleno = 4 (0x4), region = 72 }
 0x1e6   :  { %2722 = vsyncpa [#allocation3], 1 }
 0x1e7   :  { %2724 = vsyncpa [#allocation3 + $0x1], 1 }

</bundles_post_ra>
